<compile_context>
chip_gen: v7x
topology: tpu7x:2x2x1
jax: 0.10.0
libtpu: 0.0.40
codegen_flags: <defaults>
</compile_context>

<pallas_src>
import jax
import jax.numpy as jnp
import numpy as np
from jax.experimental import pallas as pl
from jax.experimental.pallas import tpu as pltpu


def gnn_kernel(ei_ref, ej_ref, c_ref, out_ref, acc_ref):
    """ei_ref : (1, TI, Dp) bf16  — i-side e tile (resident across j steps)
       ej_ref : (1, TJ, Dp) bf16  — j-side e tile
       c_ref  : (TI, TJ)    bf16  — precomputed phi*mask/deg tile
       out_ref: (1, TI, Dp) f32   — e_new tile
       acc_ref: (TI, Dp)    f32   — VMEM accumulator over the j-tile axis"""
    jt = pl.program_id(2)

    @pl.when(jt == 0)
    def _():
        acc_ref[...] = jnp.zeros_like(acc_ref)

    e_i = ei_ref[0]                         # (TI, Dp) bf16
    e_j = ej_ref[0]                         # (TJ, Dp) bf16

    # S[i, j] = <e_i, e_j>  (contract Dp on both sides; MXU, f32 accumulation)
    s = jax.lax.dot_general(
        e_i, e_j, (((1,), (1,)), ((), ())),
        preferred_element_type=jnp.float32)               # (TI, TJ) f32

    # Fold precomputed LeakyReLU(linear(A)) * mask * (1/deg); keep the
    # elementwise product in f32 (v5e has no bf16 VPU), feed bf16 to the MXU.
    c = (c_ref[...].astype(jnp.float32) * s).astype(jnp.bfloat16)  # (TI, TJ)

    # Partial e_new for this j-tile: acc[i, :] += sum_j c[i, j] * e[j, :]
    acc_ref[...] += jnp.dot(c, e_j, preferred_element_type=jnp.float32)

    @pl.when(jt == pl.num_programs(2) - 1)
    def _():
        out_ref[0, :, :] = acc_ref[...]


def _is_v5e():
    try:
        kind = jax.devices()[0].device_kind.lower()
        return ("v5 lite" in kind) or ("v5e" in kind) or ("v5litepod" in kind)
    except Exception:
        return False


def _round_up(x, m):
    return ((x + m - 1) // m) * m


def gnn_forward(e_old, A, W, bias):
    """e_old: (B,N,D) f32, A: (N,N,R) f32, W: (1,R) f32, bias: (1,1) f32."""
    f32, bf16 = jnp.float32, jnp.bfloat16
    e_old = e_old.astype(f32)
    A = A.astype(f32)
    B, N, D = e_old.shape

    # ---- edge-coefficient precompute (plain XLA, outside the hot kernel) ----
    lin = jnp.einsum('ijr,r->ij', A, W.reshape(-1)) + bias.reshape(())
    phi = jnp.where(lin > 0, lin, 0.2 * lin)                # LeakyReLU(0.2)
    mask = (jnp.sum(A, axis=-1) > 0).astype(f32)            # (N, N)
    deg = jnp.sum(mask, axis=1, keepdims=True)               # (N, 1)
    # TODO(synk): PyTorch raises if a node has zero valid neighbours; we clamp
    # the divisor to 1 (its contribution is 0 anyway).
    deg = jnp.maximum(deg, 1.0)
    coeff = phi * mask / deg                                  # (N, N) f32

    # ---- pad N and D to multiples of 128 (lane density / full MXU tiles) ----
    n_pad = _round_up(N, 128)
    d_pad = _round_up(D, 128)

    # Cast once in the wrapper: bf16 halves HBM traffic and VMEM residency;
    # padded rows/cols are zero so they contribute nothing.
    e_p = jnp.pad(e_old, ((0, 0), (0, n_pad - N), (0, d_pad - D))).astype(bf16)
    c_p = jnp.pad(coeff, ((0, n_pad - N), (0, n_pad - N))).astype(bf16)

    # ---- tile selection -----------------------------------------------------
    ti = 128 if _is_v5e() else 256                # native MXU M-tile
    if n_pad % ti != 0:
        ti = 128                                  # n_pad is a multiple of 128
    ti = min(ti, n_pad)

    def vmem_need(ti_, tj_):
        # double-buffered pipeline blocks (bf16 e_i / e_j / coeff, f32 out)
        blocks = 2 * (ti_ * d_pad * 2 + tj_ * d_pad * 2
                      + ti_ * tj_ * 2 + ti_ * d_pad * 4)
        scratch = ti_ * d_pad * 4                 # f32 accumulator
        temps = ti_ * tj_ * (4 + 4 + 2)           # S f32, coeff f32 upcast, c bf16
        return blocks + scratch + temps + (1 << 20)

    # largest multiple of 128 dividing n_pad that keeps VMEM comfortably small
    budget = 24 << 20
    tj = n_pad
    while tj > 128 and (n_pad % tj != 0 or vmem_need(ti, tj) > budget):
        tj -= 128

    need = vmem_need(ti, tj)
    # Never set the scoped limit below the real need; only raise past default.
    vmem_limit = None if need <= (32 << 20) else int(need + (4 << 20))

    grid = (n_pad // ti, B, n_pad // tj)          # j reduction axis last

    e_new_pad = pl.pallas_call(
        gnn_kernel,
        out_shape=jax.ShapeDtypeStruct((B, n_pad, d_pad), f32),
        grid=grid,
        in_specs=[
            # i-side e tile: constant across the j loop -> stays resident.
            pl.BlockSpec((1, ti, d_pad), lambda it, b, jt: (b, it, 0)),
            # j-side e tile: streams over the reduction axis.
            pl.BlockSpec((1, tj, d_pad), lambda it, b, jt: (b, jt, 0)),
            # coeff tile: independent of batch -> resident across b when tj==Np.
            pl.BlockSpec((ti, tj), lambda it, b, jt: (it, jt)),
        ],
        out_specs=pl.BlockSpec((1, ti, d_pad), lambda it, b, jt: (b, it, 0)),
        scratch_shapes=[pltpu.VMEM((ti, d_pad), jnp.float32)],
        compiler_params=pltpu.CompilerParams(
            dimension_semantics=("parallel", "arbitrary", "arbitrary"),
            vmem_limit_bytes=vmem_limit),
    )(e_p, e_p, c_p)

    e_new = e_new_pad[:, :N, :D]
    # Lane-dense concat done by XLA outside the kernel.
    return jnp.concatenate([e_old, e_new], axis=-1)


def gnn_reference(e_old, A, W, bias):
    """Loop-based NumPy reference mirroring the PyTorch module (f32)."""
    e_old = np.asarray(e_old)
    A = np.asarray(A)
    W = np.asarray(W)          # (1, R)
    b = float(np.asarray(bias).reshape(()))
    B, N, D = e_old.shape
    e_new = np.zeros((B, N, D), dtype=np.float32)
    for i in range(N):
        e_i = e_old[:, i, :]
        acc = np.zeros((B, D), dtype=np.float32)
        d_j = 0
        for j in range(N):
            a_ji = A[i, j, :]
            e_j = e_old[:, j, :]
            if a_ji.sum() > 0:
                d_j += 1
                lin = float(a_ji @ W[0] + b)
                phi = lin if lin > 0 else 0.2 * lin
                g = np.sum(e_i * e_j, axis=-1) * phi
                acc += g[:, None] * e_j
        e_new[:, i, :] = acc / max(d_j, 1)
    return np.concatenate([e_old, e_new], axis=-1)


if __name__ == "__main__":
    B, N, D, R = 2, 8, 16, 4    # batch, num_stocks, embed_dim, num_relations

    key = jax.random.PRNGKey(0)
    k1, k2, k3, k4 = jax.random.split(key, 4)

    e_old = jax.random.normal(k1, (B, N, D), dtype=jnp.float32)
    # Non-negative relation features; zero a few edges to exercise the mask.
    A = jax.random.uniform(k2, (N, N, R), dtype=jnp.float32)
    A = A.at[0, 3, :].set(0.0)
    A = A.at[2, 1, :].set(0.0)
    A = A.at[5, 5, :].set(0.0)

    W = jax.random.normal(k3, (1, R), dtype=jnp.float32) * 0.5
    bias = jax.random.normal(k4, (1, 1), dtype=jnp.float32) * 0.1

    out = jax.block_until_ready(gnn_forward(e_old, A, W, bias))

    ref = gnn_reference(e_old, A, W, bias)
    # bf16 e / coeff feeding f32-accumulating MXU matmuls -> loosened tolerance.
    np.testing.assert_allclose(np.asarray(out), ref, rtol=5e-2, atol=1e-1)

    print("KERNEL_OK")
</pallas_src>

<mosaic_0001>
module attributes {stable_mosaic.version = 11 : i64} {
  func.func @gnn_kernel(%arg0: i32, %arg1: i32, %arg2: i32, %arg3: memref<1x128x128xbf16, #tpu.memory_space<vmem>>, %arg4: memref<1x128x128xbf16, #tpu.memory_space<vmem>>, %arg5: memref<128x128xbf16, #tpu.memory_space<vmem>>, %arg6: memref<1x128x128xf32, #tpu.memory_space<vmem>>, %arg7: memref<128x128xf32, #tpu.memory_space<vmem>>) attributes {dimension_semantics = [#tpu.dimension_semantics<parallel>, #tpu.dimension_semantics<arbitrary>, #tpu.dimension_semantics<arbitrary>], iteration_bounds = array<i64: 1, 2, 1>, scalar_prefetch = 0 : i64, scratch_operands = 1 : i64, tpu.core_type = #tpu.core_type<tc>, window_params = [{transform_indices = @transform_0, window_bounds = array<i64: 1, 128, 128>}, {transform_indices = @transform_1, window_bounds = array<i64: 1, 128, 128>}, {transform_indices = @transform_2, window_bounds = array<i64: 128, 128>}, {transform_indices = @transform_3, window_bounds = array<i64: 1, 128, 128>}]} {
    %c0_i32 = arith.constant 0 : i32
    %0 = arith.cmpi eq, %arg2, %c0_i32 : i32
    %1 = arith.extui %0 : i1 to i32
    %c0_i32_0 = arith.constant 0 : i32
    %2 = arith.cmpi ne, %1, %c0_i32_0 : i32
    scf.if %2 {
      %cst_15 = arith.constant 0.000000e+00 : f32
      %19 = vector.broadcast %cst_15 : f32 to vector<128x128xf32>
      %c0_16 = arith.constant 0 : index
      %c0_17 = arith.constant 0 : index
      %20 = vector.load %arg7[%c0_16, %c0_17] : memref<128x128xf32, #tpu.memory_space<vmem>>, vector<128x128xf32>
      tpu.vector_store %arg7[%c0_16, %c0_17], %19 {strides = array<i32>} : memref<128x128xf32, #tpu.memory_space<vmem>>, vector<128x128xf32>,
    } else {
    }
    %c0 = arith.constant 0 : index
    %c0_1 = arith.constant 0 : index
    %c0_2 = arith.constant 0 : index
    %3 = vector.load %arg3[%c0, %c0_1, %c0_2] : memref<1x128x128xbf16, #tpu.memory_space<vmem>>, vector<1x128x128xbf16>
    %4 = vector.shape_cast %3 : vector<1x128x128xbf16> to vector<128x128xbf16>
    %c0_3 = arith.constant 0 : index
    %c0_4 = arith.constant 0 : index
    %c0_5 = arith.constant 0 : index
    %5 = vector.load %arg4[%c0_3, %c0_4, %c0_5] : memref<1x128x128xbf16, #tpu.memory_space<vmem>>, vector<1x128x128xbf16>
    %6 = vector.shape_cast %5 : vector<1x128x128xbf16> to vector<128x128xbf16>
    %cst = arith.constant dense<0.000000e+00> : vector<128x128xf32>
    %7 = tpu.matmul %4, %6, %cst {dimension_numbers = #tpu.dot_dimension_numbers<[1], [1], [0], [0], [0, 0, 1, 0], [], []>} : vector<128x128xbf16>, vector<128x128xbf16>, vector<128x128xf32> -> vector<128x128xf32>
    %c0_6 = arith.constant 0 : index
    %c0_7 = arith.constant 0 : index
    %8 = vector.load %arg5[%c0_6, %c0_7] : memref<128x128xbf16, #tpu.memory_space<vmem>>, vector<128x128xbf16>
    %9 = arith.extf %8 : vector<128x128xbf16> to vector<128x128xf32>
    %10 = arith.mulf %9, %7 : vector<128x128xf32>
    %11 = arith.truncf %10 : vector<128x128xf32> to vector<128x128xbf16>
    %c0_8 = arith.constant 0 : index
    %c0_9 = arith.constant 0 : index
    %12 = vector.load %arg7[%c0_8, %c0_9] : memref<128x128xf32, #tpu.memory_space<vmem>>, vector<128x128xf32>
    %cst_10 = arith.constant dense<0.000000e+00> : vector<128x128xf32>
    %13 = tpu.matmul %11, %6, %cst_10 {dimension_numbers = #tpu.dot_dimension_numbers<[1], [0], [0], [1], [0, 0, 1, 1], [], []>} : vector<128x128xbf16>, vector<128x128xbf16>, vector<128x128xf32> -> vector<128x128xf32>
    %14 = arith.addf %12, %13 : vector<128x128xf32>
    %c0_11 = arith.constant 0 : index
    %c0_12 = arith.constant 0 : index
    %15 = vector.load %arg7[%c0_11, %c0_12] : memref<128x128xf32, #tpu.memory_space<vmem>>, vector<128x128xf32>
    tpu.vector_store %arg7[%c0_11, %c0_12], %14 {strides = array<i32>} : memref<128x128xf32, #tpu.memory_space<vmem>>, vector<128x128xf32>,
    %c0_i32_13 = arith.constant 0 : i32
    %16 = arith.cmpi eq, %arg2, %c0_i32_13 : i32
    %17 = arith.extui %16 : i1 to i32
    %c0_i32_14 = arith.constant 0 : i32
    %18 = arith.cmpi ne, %17, %c0_i32_14 : i32
    scf.if %18 {
      %c0_15 = arith.constant 0 : index
      %c0_16 = arith.constant 0 : index
      %19 = vector.load %arg7[%c0_15, %c0_16] : memref<128x128xf32, #tpu.memory_space<vmem>>, vector<128x128xf32>
      %c0_17 = arith.constant 0 : index
      %c0_18 = arith.constant 0 : index
      %c0_19 = arith.constant 0 : index
      %20 = vector.load %arg6[%c0_17, %c0_18, %c0_19] : memref<1x128x128xf32, #tpu.memory_space<vmem>>, vector<1x128x128xf32>
      %21 = vector.shape_cast %20 : vector<1x128x128xf32> to vector<128x128xf32>
      %22 = vector.shape_cast %19 : vector<128x128xf32> to vector<1x128x128xf32>
      tpu.vector_store %arg6[%c0_17, %c0_18, %c0_19], %22 {strides = array<i32>} : memref<1x128x128xf32, #tpu.memory_space<vmem>>, vector<1x128x128xf32>,
    } else {
    }
    return
  }
  func.func @transform_0(%arg0: i32, %arg1: i32, %arg2: i32) -> (i32, i32, i32) {
    %c0_i32 = arith.constant 0 : i32
    %c0_i32_0 = arith.constant 0 : i32
    return %arg1, %arg0, %c0_i32 : i32, i32, i32
  }
  func.func @transform_1(%arg0: i32, %arg1: i32, %arg2: i32) -> (i32, i32, i32) {
    %c0_i32 = arith.constant 0 : i32
    %c0_i32_0 = arith.constant 0 : i32
    return %arg1, %arg2, %c0_i32 : i32, i32, i32
  }
  func.func @transform_2(%arg0: i32, %arg1: i32, %arg2: i32) -> (i32, i32) {
    %c0_i32 = arith.constant 0 : i32
    return %arg0, %arg2 : i32, i32
  }
  func.func @transform_3(%arg0: i32, %arg1: i32, %arg2: i32) -> (i32, i32, i32) {
    %c0_i32 = arith.constant 0 : i32
    %c0_i32_0 = arith.constant 0 : i32
    return %arg1, %arg0, %c0_i32 : i32, i32, i32
  }
}

</mosaic_0001>

<bundles_post_ra>
// kernel: tpu_custom_call.1
= control target key start
LH: loop header
LB: loop body
LE: loop exit
PB: predicated region body
PF: predicated region fallthrough
CT: control target
= control target key end

     0   :  { %s1701_s0 = inlined_call_operand.hbm [shape: bf16[2,128,128], index: 0, kind: input, shape index: {}]   ;;  %s1702_s1 = inlined_call_operand.hbm [shape: bf16[2,128,128], index: 1, kind: input, shape index: {}]   ;;  %s1703_s2 = inlined_call_operand.hbm [shape: bf16[128,128], index: 2, kind: input, shape index: {}]   ;;  %s1704_s3 = inlined_call_operand.hbm [shape: f32[2,128,128], index: 3, kind: output, shape index: {}]  }
   0x1   :  { %1712 = sst [smem:[#allocation14_spill]] %s1701_s0 }
   0x2   :  { %1713 = sst [smem:[#allocation15_spill]] %s1703_s2 }
   0x3   :  { %8 = vsyncpa [#allocation4], 0 }
   0x4   :  { %10 = vsyncpa [#allocation4 + $0x1], 0 }
   0x5   :  { %11 = vsyncpa [#allocation7], 0 }
   0x6   :  { %13 = vsyncpa [#allocation7 + $0x1], 0 }
   0x7   :  { %14 = vsyncpa [#allocation5], 0 }
   0x8   :  { %16 = vsyncpa [#allocation5 + $0x1], 0  ;;  %s1395_s12 = smov 0   ;;  %s1397_s13 = smov 0  }
   0x9   :  { %s1399_s14 = smov 0   ;;  %s1401_s15 = smov 0  }
   0xa   :  { %s1403_s16 = smov 0   ;;  %s1405_s17 = smov 0  }
   0xb LB: > { %s1426_s18 = sadd.s32 4294967295, %s1365_s17   ;;  %s915_s19 = sadd.s32 4294967294, %s1365_s17   ;;  %s1365_s17 = sphi %s1405_s17, %s22_s17   ;;  %s1361_s16 = sphi %s1403_s16, %s1736_s16   ;;  %s1357_s15 = sphi %s1401_s15, %s1735_s15   ;;  %s1353_s14 = sphi %s1399_s14, %s1734_s14   ;;  %s1349_s13 = sphi %s1397_s13, %s1733_s13   ;;  %s1345_s12 = sphi %s1395_s12, %s1732_s12  }
   0xc   : > { %p63_p0 = scmp.ne.s32.totalorder %s1349_s13, %s1345_s12  ;;  %p1705_p1 = scmp.eq.s32.totalorder %s1426_s18, 0 }
   0xd   : > { %p151_p3 = scmp.eq.s32.totalorder %s915_s19, 1  ;;  %p916_p5 = scmp.ge.s32.totalorder %s1365_s17, 1 }
   0xe   : > { %p1435_p4 = por %p1705_p1, %p63_p0  ;;  %p158_p7 = scmp.lt.s32.totalorder %s1365_s17, 3 }
   0xf   : > { %p1440_p6 = por %p151_p3, %p63_p0  ;;  %s1367_s23 = smov [#allocation8]  }
  0x10   : > { %s1714_s20 = scalar_select %p1435_p4, 1, 0 }
  0x11   : > { %s1715_s21 = scalar_select %p1440_p6, 1, 0 }
  0x12   : > { %p1445_p8 = pnand %p916_p5, %p158_p7  ;;  %s174_s24 = sshll.u32 %s1367_s23, 4  ;;  %s175_s24 = int_to_ptr.vmem [resolvable:$true] %s174_s24 }
  0x13   : > { %s37_s26 = sadd.s32 1, %s1361_s16  ;;  %s1718_s2 = sld [smem:[#allocation15_spill]] }
  0x14   : > { %s1716_s22 = scalar_select %p1445_p8, 1, 0 }
  0x15   : > { %p1099_p9 = pneg %p1445_p8 }
  0x17   : > { %p1454_p11 = pnand %p1099_p9, %p1705_p1 }
  0x19   : > { %s1187_s29 = scalar_lea.hbm %s1718_s2, 1024  ;;  %p1189_p13 = pneg %p1454_p11 }
  0x1a   : > { %p1188_p12 = scmp.ne.s32.totalorder %s1718_s2, %s1187_s29  ;;  %p1194_p5 = scmp.lt.u32.totalorder %s1187_s29, %s1718_s2 }
  0x1c   : > { %p1190_p0 = pnand %p1189_p13, %p1188_p12 }
  0x1e   : > { %p1191_p3 = pneg %p1190_p0 }
  0x20   : > { %p1196_p7 = pnand %p1194_p5, %p1191_p3 }
  0x22   : > { %1199 = shalt.err (!%p1196_p7)
}
  0x23   : > { %s1200_s7 = scalar_lea.vmem %s175_s24, 1024  ;;  %p1208_p2 = scmp.lt.s32.totalorder %s175_s24, %s175_s24 }
  0x24   : > { %p1201_p9 = scmp.ne.s32.totalorder %s175_s24, %s1200_s7  ;;  %p1209_p6 = scmp.lt.s32.totalorder %s1200_s7, %s1200_s7 }
  0x26   : > { %p1203_p10 = pnand %p1201_p9, %p1189_p13  ;;  %p1210_p4 = por %p1209_p6, %p1208_p2 }
  0x28   : > { %p1204_p1 = pneg %p1203_p10 }
  0x2a   : > { %p1211_p8 = pnand %p1210_p4, %p1204_p1 }
  0x2c   : > { %1214 = shalt.err (!%p1211_p8)
}
  0x2d   : > { %s1708_s8 = smov 64   ;;  %s1710_s9 = smov 4  }
  0x2e   : > { %1102 = dma.hbm_to_vmem [thread:$0]  (!%p1454_p11), %s1718_s2, 1024, %s175_s24, [#allocation7], %s1708_s8, %s1708_s8, %s1710_s9  }
  0x2f   : > { %p39_p1 = scmp.ge.s32.totalorder %s37_s26, 2  ;;  %s50_s19 = sadd.s32 1, %s1353_s14 }
  0x30   : > { %p57_p2 = scmp.ne.s32.totalorder %s1353_s14, %s1349_s13  ;;  %p58_p4 = scmp.eq.s32.totalorder %s1365_s17, 0 }
  0x31   : > { %s1738_s26 = smov (%p39_p1, %s37_s26), 0  ;;  %p1720_p8 = scmp.eq.s32.totalorder %s1426_s18, 1 }
  0x32   : > { %p1484_p6 = por %p58_p4, %p57_p2  ;;  %s45_s27 = ssub.s32 %s1361_s16, %s1738_s26 }
  0x33   : > { %p1490_p10 = por %p1720_p8, %p57_p2  ;;  %p1115_p12 = scmp.lt.s32.totalorder %s1365_s17, 2 }
  0x34   : > { %p48_p11 = scmp.eq.s32.totalorder %s45_s27, 0  ;;  %s188_s24 = sand.u32 1, %s1353_s14  }
  0x35   : > { %s919_s28 = sshll.u32 %s188_s24, 6  ;;  %s951_s30 = sshll.u32 %s1361_s16, 10 }
  0x36   : > { %s1499_s29 = scalar_select %p48_p11, %s1353_s14, %s50_s19  }
  0x37   : > { %s1722_s0 = sld [smem:[#allocation14_spill]]  ;;  %s192_s7 = scalar_lea.vmem [#allocation3], %s919_s28 }
  0x38   : > { %s201_s10 = sshll.u32 %s192_s7, 4  ;;  %p1511_p13 = pnand %p1115_p12, %p1484_p6  ;;  %s1507_s10 = int_to_ptr.vmem [resolvable:$true] %s201_s10 }
  0x39   : > { %s1518_s4 = scalar_lea.hbm %s1702_s1, %s951_s30  ;;  %s215_s5 = scalar_lea.vmem [#allocation6], %s919_s28 }
  0x3a   : > { %s1520_s8 = sshll.u32 %s215_s5, 4  ;;  %s1522_s9 = scalar_lea.sflag [#allocation4], %s188_s24  ;;  %s1554_s8 = int_to_ptr.vmem [resolvable:$true] %s1520_s8 }
  0x3b   : > { %p1217_p3 = pneg %p1511_p13 }
  0x3d   : > { %s1505_s6 = scalar_lea.hbm %s1722_s0, %s951_s30  ;;  %s1220_s19 = scalar_lea.hbm %s1722_s0, 2048 }
  0x3e   : > { %s1215_s7 = scalar_lea.hbm %s1505_s6, 1024  ;;  %p1221_p9 = scmp.lt.u32.totalorder %s1505_s6, %s1722_s0 }
  0x3f   : > { %p1216_p0 = scmp.ne.s32.totalorder %s1505_s6, %s1215_s7  ;;  %p1222_p1 = scmp.lt.u32.totalorder %s1220_s19, %s1215_s7 }
  0x40   : > { %p1224_p4 = scmp.lt.u32.totalorder %s1215_s7, %s1505_s6 }
  0x41   : > { %p1218_p5 = pnand %p1217_p3, %p1216_p0  ;;  %p1223_p2 = por %p1222_p1, %p1221_p9 }
  0x43   : > { %p1219_p7 = pneg %p1218_p5  ;;  %p1225_p6 = por %p1224_p4, %p1223_p2 }
  0x45   : > { %p1226_p8 = pnand %p1225_p6, %p1219_p7 }
  0x47   : > { %1229 = shalt.err (!%p1226_p8)
}
  0x48   : > { %s1230_s24 = scalar_lea.vmem %s1507_s10, 1024  ;;  %s1370_s2 = smov [#allocation3]  }
  0x49   : > { %p1231_p12 = scmp.ne.s32.totalorder %s1507_s10, %s1230_s24  ;;  %s1235_s28 = sshll.u32 %s1370_s2, 4  ;;  %s1236_s28 = int_to_ptr.vmem [resolvable:$false] %s1235_s28 }
  0x4a   : > { %s1237_s5 = scalar_lea.vmem %s1236_s28, 2048  ;;  %p1238_p5 = scmp.lt.s32.totalorder %s1507_s10, %s1236_s28 }
  0x4b   : > { %p1233_p11 = pnand %p1231_p12, %p1217_p3  ;;  %p1239_p9 = scmp.lt.s32.totalorder %s1237_s5, %s1230_s24 }
  0x4d   : > { %p1234_p0 = pneg %p1233_p11  ;;  %p1240_p1 = por %p1239_p9, %p1238_p5 }
  0x4f   : > { %p1241_p2 = pnand %p1240_p1, %p1234_p0 }
  0x51   : > { %1244 = shalt.err (!%p1241_p2)
}
  0x52   : > { %s1724_s7 = smov 4   ;;  %s1725_s23 = smov 64  }
  0x53   : > { %1106 = dma.hbm_to_vmem [thread:$0]  (!%p1511_p13), %s1505_s6, 1024, %s1507_s10, %s1522_s9, %s1725_s23, %s1725_s23, %s1724_s7  }
  0x54   : > { %s211_s19 = sand.u32 1, %s1365_s17   ;;  %s1245_s30 = scalar_lea.hbm %s1518_s4, 1024 }
  0x55   : > { %s1557_s27 = scalar_lea.sflag [#allocation7], %s211_s19  ;;  %p1246_p7 = scmp.ne.s32.totalorder %s1518_s4, %s1245_s30 }
  0x56   : > { %s1250_s28 = scalar_lea.hbm %s1702_s1, 2048  ;;  %p1251_p8 = scmp.lt.u32.totalorder %s1518_s4, %s1702_s1 }
  0x57   : > { %p1248_p4 = pnand %p1246_p7, %p1217_p3  ;;  %p1252_p12 = scmp.lt.u32.totalorder %s1250_s28, %s1245_s30 }
  0x58   : > { %p1254_p0 = scmp.lt.u32.totalorder %s1245_s30, %s1518_s4 }
  0x59   : > { %p1249_p6 = pneg %p1248_p4  ;;  %p1253_p11 = por %p1252_p12, %p1251_p8 }
  0x5b   : > { %p1255_p5 = por %p1254_p0, %p1253_p11 }
  0x5d   : > { %p1256_p9 = pnand %p1255_p5, %p1249_p6 }
  0x5f   : > { %1259 = shalt.err (!%p1256_p9)
}
  0x60   : > { %s1260_s9 = scalar_lea.vmem %s1554_s8, 1024  ;;  %s1371_s6 = smov [#allocation6]  }
  0x61   : > { %p1261_p1 = scmp.ne.s32.totalorder %s1554_s8, %s1260_s9  ;;  %s1265_s10 = sshll.u32 %s1371_s6, 4  ;;  %s1266_s10 = int_to_ptr.vmem [resolvable:$false] %s1265_s10 }
  0x62   : > { %s1267_s0 = scalar_lea.vmem %s1266_s10, 2048  ;;  %p1268_p4 = scmp.lt.s32.totalorder %s1554_s8, %s1266_s10 }
  0x63   : > { %p1263_p2 = pnand %p1261_p1, %p1217_p3  ;;  %p1269_p8 = scmp.lt.s32.totalorder %s1267_s0, %s1260_s9 }
  0x65   : > { %p1264_p7 = pneg %p1263_p2  ;;  %p1270_p12 = por %p1269_p8, %p1268_p4 }
  0x67   : > { %p1271_p11 = pnand %p1270_p12, %p1264_p7 }
  0x69   : > { %1274 = shalt.err (!%p1271_p11)
}
  0x6a   : > { %1109 = dma.hbm_to_vmem [thread:$0]  (!%p1511_p13), %s1518_s4, 1024, %s1554_s8, %s1557_s27, %s1725_s23, %s1725_s23, %s1724_s7  }
  0x6b   : > { %p1726_p3 = scmp.ne.s32.totalorder %s1716_s22, 0 }
  0x6c   : > { %s1589_s19 = sand.u32 (!%p1726_p3), 1, %s1349_s13   ;;  %p1727_p6 = scmp.ne.s32.totalorder (!%p1726_p3), %s1714_s20, 0 }
  0x6d   : > { %236 = sbr.rel (%p1726_p3) target bundleno = 662 (0x296), region = 32  ;;  %s926_s30 = sshll.u32 (!%p1726_p3), %s1589_s19, 6 }
  0x6e   : > { %s239_s24 = scalar_lea.sflag (!%p1726_p3), [#allocation4], %s1589_s19  ;;  %s1593_s2 = scalar_lea.vmem (!%p1726_p3), [#allocation3], %s926_s30 }
  0x74   : > { %1328 = dma.done.wait (%p1727_p6), %s239_s24, 1024  }
  0x75   : > { %1330 = vsyncadd (%p1727_p6), %s239_s24, 4294966272  ;;  %s247_s8 = sand.u32 1, %s1426_s18   ;;  %s1600_s11 = scalar_lea.vmem [#allocation6], %s926_s30 }
  0x76   : > { %s248_s22 = scalar_lea.sflag [#allocation7], %s247_s8 }
  0x77   : > { %1332 = dma.done.wait (%p1727_p6), %s248_s22, 1024  }
  0x78   : > { %1334 = vsyncadd (%p1727_p6), %s248_s22, 4294966272  ;;  %p1728_p13 = scmp.eq.s32.totalorder %s1426_s18, 0 }
  0x7a   : > { %1336 = dma.done.wait (%p1728_p13), [#allocation7], 1024   ;;  %p1729_p0 = pmov %p1728_p13 }
  0x7b   : > { %v1171_v0 = vld [vmem:[%s1600_s11] sm:$0xff]   ;;  %v1172_v1 = vld [vmem:[%s1600_s11 + $0x8] sm:$0xff]   ;;  %v1173_v2 = vld [vmem:[%s1600_s11 + $0x10] sm:$0xff]   ;;  %s929_s18 = sshll.u32 %s1589_s19, 7  ;;  %s953_s4 = sshll.u32 %s1357_s15, 11 }
  0x7c   : > { %1338 = vsyncadd (%p1729_p0), [#allocation7], 4294966272  ;;  %1025 = vmatprep.subr.bf16.mxu0 %v1171_v0  ;;  %1057 = vmatprep.subr.bf16.mxu1 %v1171_v0  ;;  %v1179_v3 = vld [vmem:[%s1593_s2] sm:$0xff]   ;;  %v1174_v4 = vld [vmem:[%s1600_s11 + $0x18] sm:$0xff]   ;;  %s1627_s20 = scalar_lea.vmem [#allocation9], %s929_s18  ;;  %s1647_s28 = scalar_lea.hbm %s1704_s3, %s953_s4 }
  0x7d   : > { %1026 = vmatpush3.bf16.xpose.msra.mxu0 %v1171_v0  ;;  %1058 = vmatpush3.bf16.msra.mxu1 %v1171_v0  ;;  %v1175_v5 = vld [vmem:[%s1600_s11 + $0x20] sm:$0xff]   ;;  %v1176_v6 = vld [vmem:[%s1600_s11 + $0x28] sm:$0xff]   ;;  %v1177_v7 = vld [vmem:[%s1600_s11 + $0x30] sm:$0xff]   ;;  %s785_s7 = sshll.u32 %s1627_s20, 4  ;;  %s770_s15 = scalar_lea.sflag [#allocation5], %s1589_s19  ;;  %s1649_s7 = int_to_ptr.vmem [resolvable:$true] %s785_s7 }
  0x7e   : > { %1027 = vmatprep.subr.bf16.mxu0 %v1172_v1  ;;  %1059 = vmatprep.subr.bf16.mxu1 %v1172_v1  ;;  %v1178_v8 = vld [vmem:[%s1600_s11 + $0x38] sm:$0xff]   ;;  %v1180_v9 = vld [vmem:[%s1593_s2 + $0x8] sm:$0xff]   ;;  %v1181_v10 = vld [vmem:[%s1593_s2 + $0x10] sm:$0xff]   ;;  %s1275_s5 = scalar_lea.vmem %s1649_s7, 2048  ;;  %s1372_s9 = smov [#allocation9]  }
  0x7f   : > { %1041 = vmatprep.mubr.bf16.mxu0 %v1179_v3  ;;  %v1182_v11 = vld [vmem:[%s1593_s2 + $0x18] sm:$0xff]   ;;  %v1183_v12 = vld [vmem:[%s1593_s2 + $0x20] sm:$0xff]   ;;  %v1184_v13 = vld [vmem:[%s1593_s2 + $0x28] sm:$0xff]   ;;  %p1276_p5 = scmp.ne.s32.totalorder %s1649_s7, %s1275_s5  ;;  %s1279_s6 = sshll.u32 %s1372_s9, 4  ;;  %s1280_s6 = int_to_ptr.vmem [resolvable:$false] %s1279_s6 }
  0x80   : > { %v1185_v14 = vld [vmem:[%s1593_s2 + $0x30] sm:$0xff]   ;;  %v1186_v15 = vld [vmem:[%s1593_s2 + $0x38] sm:$0xff]   ;;  %v986_v16 = vld [vmem:[#allocation8 + $0x8] sm:$0xff]   ;;  %s1281_s10 = scalar_lea.vmem %s1280_s6, 4096  ;;  %p1282_p2 = scmp.lt.s32.totalorder %s1649_s7, %s1280_s6 }
  0x81   : > { %1060 = vmatpush3.bf16.msra.mxu1 %v1172_v1  ;;  %v955_v17 = vld [vmem:[#allocation8] sm:$0xff]   ;;  %v960_v18 = vunpack.c.l.bf16 %v986_v16  ;;  %v961_v19 = vunpack.c.h.bf16 %v986_v16  ;;  %v988_v30 = vld [vmem:[#allocation8 + $0x18] sm:$0xff]   ;;  %v987_v32 = vld [vmem:[#allocation8 + $0x10] sm:$0xff]   ;;  %p1277_p9 = pnand %p1276_p5, %p1490_p10  ;;  %p1283_p7 = scmp.lt.s32.totalorder %s1281_s10, %s1275_s5 }
  0x82   : > { %1061 = vmatprep.subr.bf16.mxu1 %v1173_v2  ;;  %v956_v21 = vunpack.c.l.bf16 %v955_v17  ;;  %v957_v22 = vunpack.c.h.bf16 %v955_v17  ;;  %v968_v34 = vunpack.c.l.bf16 %v988_v30  ;;  %v969_v35 = vunpack.c.h.bf16 %v988_v30  ;;  %v990_v46 = vld [vmem:[#allocation8 + $0x28] sm:$0xff]   ;;  %v989_v48 = vld [vmem:[#allocation8 + $0x20] sm:$0xff]   ;;  %v992_v62 = vld [vmem:[#allocation8 + $0x38] sm:$0xff]  }
  0x83   : > { %v964_v37 = vunpack.c.l.bf16 %v987_v32  ;;  %v965_v38 = vunpack.c.h.bf16 %v987_v32  ;;  %v976_v50 = vunpack.c.l.bf16 %v990_v46  ;;  %v977_v51 = vunpack.c.h.bf16 %v990_v46  ;;  %v991_v0 = vld [vmem:[#allocation8 + $0x30] sm:$0xff]   ;;  %p1278_p1 = pneg %p1277_p9  ;;  %p1284_p4 = por %p1283_p7, %p1282_p2 }
  0x84   : > { %v972_v53 = vunpack.c.l.bf16 %v989_v48  ;;  %v973_v54 = vunpack.c.h.bf16 %v989_v48  ;;  %v985_v3 = vunpack.c.h.bf16 %v992_v62 }
  0x85   : > { %1028 = vmatpush3.bf16.xpose.msra.mxu0 %v1172_v1  ;;  %1062 = vmatpush3.bf16.msra.mxu1 %v1173_v2  ;;  %p1285_p8 = pnand %p1284_p4, %p1278_p1 }
  0x86   : > { %1029 = vmatprep.subr.bf16.mxu0 %v1173_v2  ;;  %1063 = vmatprep.subr.bf16.mxu1 %v1174_v4 }
  0x89   : > { %1064 = vmatpush3.bf16.msra.mxu1 %v1174_v4 }
  0x8a   : > { %1065 = vmatprep.subr.bf16.mxu1 %v1175_v5 }
  0x8d   : > { %1030 = vmatpush3.bf16.xpose.msra.mxu0 %v1173_v2  ;;  %1066 = vmatpush3.bf16.msra.mxu1 %v1175_v5  ;;  %v984_v2 = vunpack.c.l.bf16 %v992_v62 }
  0x8e   : > { %1031 = vmatprep.subr.bf16.mxu0 %v1174_v4  ;;  %1067 = vmatprep.subr.bf16.mxu1 %v1176_v6 }
  0x91   : > { %1068 = vmatpush3.bf16.msra.mxu1 %v1176_v6 }
  0x92   : > { %1069 = vmatprep.subr.bf16.mxu1 %v1177_v7 }
  0x95   : > { %1032 = vmatpush3.bf16.xpose.msra.mxu0 %v1174_v4  ;;  %1070 = vmatpush3.bf16.msra.mxu1 %v1177_v7 }
  0x96   : > { %1033 = vmatprep.subr.bf16.mxu0 %v1175_v5  ;;  %1071 = vmatprep.subr.bf16.mxu1 %v1178_v8 }
  0x99   : > { %1072 = vmatpush3.bf16.msra.mxu1 %v1178_v8 }
  0x9d   : > { %1034 = vmatpush3.bf16.xpose.msra.mxu0 %v1175_v5  ;;  %v980_v5 = vunpack.c.l.bf16 %v991_v0 }
  0x9e   : > { %1035 = vmatprep.subr.bf16.mxu0 %v1176_v6 }
  0xa5   : > { %1036 = vmatpush3.bf16.xpose.msra.mxu0 %v1176_v6  ;;  %v981_v6 = vunpack.c.h.bf16 %v991_v0 }
  0xa6   : > { %1037 = vmatprep.subr.bf16.mxu0 %v1177_v7 }
  0xad   : > { %1038 = vmatpush3.bf16.xpose.msra.mxu0 %v1177_v7 }
  0xae   : > { %1039 = vmatprep.subr.bf16.mxu0 %v1178_v8 }
  0xb5   : > { %1040 = vmatpush3.bf16.xpose.msra.mxu0 %v1178_v8 }
  0xbc   : > { %1042 = vmatmul.mubr.bf16.vlgmr.msra.gmra.mrb[0].mxu0 %v1180_v9 }
  0xbd   : > { %1045 = vmatprep.mubr.bf16.mxu0 %v1181_v10 }
  0xc4   : > { %1046 = vmatmul.mubr.bf16.gmra.mrb[4].mxu0 %v1182_v11 }
  0xc5   : > { %1049 = vmatprep.mubr.bf16.mxu0 %v1183_v12 }
  0xcc   : > { %1050 = vmatmul.mubr.bf16.gmra.mrb[8].mxu0 %v1184_v13 }
  0xcd   : > { %1053 = vmatprep.mubr.bf16.mxu0 %v1185_v14 }
  0xd4   : > { %1054 = vmatmul.mubr.bf16.gmra.mrb[12].mxu0 %v1186_v15 }
 0x18f   : > { %v1043_v20 = vpop.f32.mrb[0].mxu0 }
 0x190   : > { %v470_v23 = vpop.f32.mrb[1].mxu0  ;;  %v567_v25 = vmul.f32 %v1043_v20, %v960_v18 }
 0x191   : > { %v1044_v24 = vpop.f32.mrb[2].mxu0  ;;  %v565_v28 = vmul.f32 %v956_v21, %v470_v23 }
 0x192   : > { %v568_v26 = vmul.f32 %v1044_v24, %v961_v19  ;;  %v473_v27 = vpop.f32.mrb[3].mxu0 }
 0x193   : > { %v566_v29 = vmul.f32 %v957_v22, %v473_v27 }
 0x194   : > { %v582_v31 = vpack.c.bf16 %v568_v26, %v567_v25 }
 0x195   : > { %v581_v33 = vpack.c.bf16 %v566_v29, %v565_v28 }
 0x197   : > { %v1047_v36 = vpop.f32.mrb[4].mxu0  ;;  %1073 = vmatprep.mubr.bf16.mxu1 %v581_v33 }
 0x198   : > { %v486_v39 = vpop.f32.mrb[5].mxu0  ;;  %1074 = vmatmul.mubr.bf16.vlgmr.msra.gmra.mrb[0].mxu1 %v582_v31  ;;  %v571_v41 = vmul.f32 %v1047_v36, %v968_v34 }
 0x199   : > { %v1048_v40 = vpop.f32.mrb[6].mxu0  ;;  %v569_v44 = vmul.f32 %v964_v37, %v486_v39 }
 0x19a   : > { %v572_v42 = vmul.f32 %v1048_v40, %v969_v35  ;;  %v489_v43 = vpop.f32.mrb[7].mxu0 }
 0x19b   : > { %v570_v45 = vmul.f32 %v965_v38, %v489_v43 }
 0x19c   : > { %v584_v47 = vpack.c.bf16 %v572_v42, %v571_v41 }
 0x19d   : > { %v583_v49 = vpack.c.bf16 %v570_v45, %v569_v44 }
 0x19f   : > { %v1051_v52 = vpop.f32.mrb[8].mxu0  ;;  %1077 = vmatprep.mubr.bf16.mxu1 %v583_v49 }
 0x1a0   : > { %v502_v55 = vpop.f32.mrb[9].mxu0  ;;  %1078 = vmatmul.mubr.bf16.gmra.mrb[4].mxu1 %v584_v47  ;;  %v575_v57 = vmul.f32 %v1051_v52, %v976_v50 }
 0x1a1   : > { %v1052_v56 = vpop.f32.mrb[10].mxu0  ;;  %v573_v60 = vmul.f32 %v972_v53, %v502_v55 }
 0x1a2   : > { %v576_v58 = vmul.f32 %v1052_v56, %v977_v51  ;;  %v505_v59 = vpop.f32.mrb[11].mxu0 }
 0x1a3   : > { %v574_v61 = vmul.f32 %v973_v54, %v505_v59 }
 0x1a4   : > { %v586_v63 = vpack.c.bf16 %v576_v58, %v575_v57 }
 0x1a5   : > { %v585_v1 = vpack.c.bf16 %v574_v61, %v573_v60 }
 0x1a7   : > { %v1055_v4 = vpop.f32.mrb[12].mxu0  ;;  %1081 = vmatprep.mubr.bf16.mxu1 %v585_v1 }
 0x1a8   : > { %v518_v7 = vpop.f32.mrb[13].mxu0  ;;  %1082 = vmatmul.mubr.bf16.gmra.mrb[8].mxu1 %v586_v63  ;;  %v579_v9 = vmul.f32 %v1055_v4, %v984_v2 }
 0x1a9   : > { %v1056_v8 = vpop.f32.mrb[14].mxu0  ;;  %v577_v12 = vmul.f32 %v980_v5, %v518_v7 }
 0x1aa   : > { %v580_v10 = vmul.f32 %v1056_v8, %v985_v3  ;;  %v521_v11 = vpop.f32.mrb[15].mxu0 }
 0x1ab   : > { %v578_v13 = vmul.f32 %v981_v6, %v521_v11 }
 0x1ac   : > { %v588_v14 = vpack.c.bf16 %v580_v10, %v579_v9 }
 0x1ad   : > { %v587_v15 = vpack.c.bf16 %v578_v13, %v577_v12 }
 0x1af   : > { %1085 = vmatprep.mubr.bf16.mxu1 %v587_v15 }
 0x1b0   : > { %1086 = vmatmul.mubr.bf16.gmra.mrb[12].mxu1 %v588_v14 }
 0x26b   : > { %v1075_v16 = vpop.f32.mrb[0].mxu1 }
 0x26c   : > { %755 = vst [vmem:[%s1627_s20 + $0x10] sm:$0xff] %v1075_v16  ;;  %v639_v17 = vpop.f32.mrb[1].mxu1 }
 0x26d   : > { %753 = vst [vmem:[%s1627_s20] sm:$0xff] %v639_v17  ;;  %v1076_v18 = vpop.f32.mrb[2].mxu1 }
 0x26e   : > { %756 = vst [vmem:[%s1627_s20 + $0x18] sm:$0xff] %v1076_v18  ;;  %v642_v19 = vpop.f32.mrb[3].mxu1 }
 0x26f   : > { %754 = vst [vmem:[%s1627_s20 + $0x8] sm:$0xff] %v642_v19 }
 0x273   : > { %v1079_v20 = vpop.f32.mrb[4].mxu1 }
 0x274   : > { %759 = vst [vmem:[%s1627_s20 + $0x30] sm:$0xff] %v1079_v20  ;;  %v655_v21 = vpop.f32.mrb[5].mxu1 }
 0x275   : > { %757 = vst [vmem:[%s1627_s20 + $0x20] sm:$0xff] %v655_v21  ;;  %v1080_v22 = vpop.f32.mrb[6].mxu1 }
 0x276   : > { %760 = vst [vmem:[%s1627_s20 + $0x38] sm:$0xff] %v1080_v22  ;;  %v658_v23 = vpop.f32.mrb[7].mxu1 }
 0x277   : > { %758 = vst [vmem:[%s1627_s20 + $0x28] sm:$0xff] %v658_v23 }
 0x27b   : > { %v1083_v24 = vpop.f32.mrb[8].mxu1 }
 0x27c   : > { %763 = vst [vmem:[%s1627_s20 + $0x50] sm:$0xff] %v1083_v24  ;;  %v671_v25 = vpop.f32.mrb[9].mxu1 }
 0x27d   : > { %761 = vst [vmem:[%s1627_s20 + $0x40] sm:$0xff] %v671_v25  ;;  %v1084_v26 = vpop.f32.mrb[10].mxu1 }
 0x27e   : > { %764 = vst [vmem:[%s1627_s20 + $0x58] sm:$0xff] %v1084_v26  ;;  %v674_v27 = vpop.f32.mrb[11].mxu1 }
 0x27f   : > { %762 = vst [vmem:[%s1627_s20 + $0x48] sm:$0xff] %v674_v27 }
 0x283   : > { %v1087_v28 = vpop.f32.mrb[12].mxu1 }
 0x284   : > { %767 = vst [vmem:[%s1627_s20 + $0x70] sm:$0xff] %v1087_v28  ;;  %v687_v29 = vpop.f32.mrb[13].mxu1 }
 0x285   : > { %765 = vst [vmem:[%s1627_s20 + $0x60] sm:$0xff] %v687_v29  ;;  %v1088_v30 = vpop.f32.mrb[14].mxu1 }
 0x286   : > { %768 = vst [vmem:[%s1627_s20 + $0x78] sm:$0xff] %v1088_v30  ;;  %v690_v31 = vpop.f32.mrb[15].mxu1 }
 0x287   : > { %766 = vst [vmem:[%s1627_s20 + $0x68] sm:$0xff] %v690_v31 }
 0x288   : > { %1288 = shalt.err (!%p1285_p8)
}
 0x289   : > { %s1289_s0 = scalar_lea.hbm %s1647_s28, 2048  ;;  %s1293_s2 = scalar_lea.hbm %s1704_s3, 4096 }
 0x28a   : > { %p1290_p12 = scmp.ne.s32.totalorder %s1647_s28, %s1289_s0  ;;  %p1294_p6 = scmp.lt.u32.totalorder %s1647_s28, %s1704_s3 }
 0x28b   : > { %p1295_p13 = scmp.lt.u32.totalorder %s1293_s2, %s1289_s0  ;;  %p1297_p5 = scmp.lt.u32.totalorder %s1289_s0, %s1647_s28 }
 0x28c   : > { %p1291_p11 = pnand %p1290_p12, %p1490_p10 }
 0x28d   : > { %p1296_p0 = por %p1295_p13, %p1294_p6 }
 0x28e   : > { %p1292_p3 = pneg %p1291_p11 }
 0x28f   : > { %p1298_p9 = por %p1297_p5, %p1296_p0 }
 0x291   : > { %p1299_p1 = pnand %p1298_p9, %p1292_p3 }
 0x293   : > { %1302 = shalt.err (!%p1299_p1)
}
 0x294   : > { %s1373_s11 = smov 128   ;;  %s1374_s18 = smov 8  }
 0x295   : > { %1097 = dma.vmem_to_hbm [thread:$0]  (%p1490_p10), %s1649_s7, 2048, %s1647_s28, %s770_s15, %s1373_s11, %s1373_s11, %s1374_s18  }
 0x296 PF: > { %s800_s20 = sand.u32 1, %s1345_s12   ;;  %p1730_p2 = scmp.ne.s32.totalorder %s1715_s21, 0 }
 0x297   : > { %p1731_p7 = scmp.ge.s32.totalorder %s1365_s17, 2  ;;  %s801_s4 = scalar_lea.sflag [#allocation5], %s800_s20 }
 0x299   : > { %p1111_p4 = pnand %p1731_p7, %p1730_p2 }
 0x29b   : > { %1340 = dma.done.wait (!%p1111_p4), %s801_s4, 2048  }
 0x29c   : > { %1342 = vsyncadd (!%p1111_p4), %s801_s4, 4294965248  ;;  %s22_s17 = sadd.s32 1, %s1365_s17   ;;  %s1732_s12 = smov %s1349_s13 }
 0x29d   : > { %p19_p8 = scmp.ge.s32.totalorder %s22_s17, 4   ;;  %s1733_s13 = smov %s1353_s14 }
 0x29e   : > { %s1734_s14 = smov %s1499_s29  ;;  %s1735_s15 = smov %s1361_s16 }
 0x29f   : > { %s1736_s16 = smov %s1738_s26  ;;  %21 = sbr.rel (!%p19_p8) target bundleno = 11 (0xb), region = 103 }
 0x2a6   :  { %806 = vsyncpa [#allocation4], 1 }
 0x2a7   :  { %808 = vsyncpa [#allocation4 + $0x1], 1 }
 0x2a8   :  { %809 = vsyncpa [#allocation7], 1 }
 0x2a9   :  { %811 = vsyncpa [#allocation7 + $0x1], 1 }
 0x2aa   :  { %812 = vsyncpa [#allocation5], 1 }
 0x2ab   :  { %814 = vsyncpa [#allocation5 + $0x1], 1 }

</bundles_post_ra>
